<compile_context>
chip_gen: v5e
topology: v5e:2x2
jax: 0.10.0
libtpu: 0.0.40
codegen_flags: <defaults>
</compile_context>

<pallas_src>
import functools

import numpy as np
import jax
import jax.numpy as jnp
from jax.experimental import pallas as pl
from jax.experimental.pallas import tpu as pltpu


def _round_up(n, m):
    return ((n + m - 1) // m) * m


def _leaky_relu(x, slope=0.2):
    return jnp.where(x >= 0, x, slope * x)


# -----------------------------------------------------------------------------
# Kernel: one grid step processes a block of G seller graphs.
# -----------------------------------------------------------------------------
def seller_gat_kernel(
    x_cat_ref,      # (G*P_pad, 4F) bf16  [vision|text|multimodal|ensemble] rows
    review_x_ref,   # (G*R_pad, F)  bf16
    assign_ref,     # (G, P_pad, R_pad) f32  product -> review incidence (0/1)
    pmask_ref,      # (G*P_pad, 1)  f32  1.0 for real products, 0.0 for padding
    w_cat_ref,      # (4F, H) bf16  stacked W_src of the 4 one-to-one edge types
    w_rev_ref,      # (F, H)  bf16  W_src of review->product
    a_fold_ref,     # (F, 1)  bf16  W_rev @ att_src (folded attention vector)
    bias_ref,       # (1, H)  f32   sum of the 5 '->product' conv biases
    emb_ref,        # (G*P_pad, H) f32  OUT: product embeddings
):
    f32 = jnp.float32
    G, P_pad, R_pad = assign_ref.shape
    H = w_cat_ref.shape[1]

    # -- 1) four one-to-one edge types fused into ONE K=4F bf16 MXU matmul --
    # (exactly one incoming edge per product per type => softmax weight == 1)
    acc = jnp.dot(x_cat_ref[...], w_cat_ref[...], preferred_element_type=f32)

    # -- 2) review -> product grouped softmax attention --
    rx = review_x_ref[...]
    hs_r = jnp.dot(rx, w_rev_ref[...], preferred_element_type=f32)      # (G*R, H)
    # Per-review logit as an independent K=F matmul (no transposed contraction
    # of hs_r, nothing serialized behind the hs_r MXU pop).  The dst-side term
    # att_dst.(W_dst @ product.x) is identically 0 (product.x == zeros(1,1)).
    logit = _leaky_relu(
        jnp.dot(rx, a_fold_ref[...], preferred_element_type=f32))       # (G*R, 1)
    # Shift-invariant safe softmax with one block-global max.  Masking is done
    # implicitly by the 0/1 incidence, so no -1e30 / where path is needed and
    # everything here stays f32.
    m = jnp.max(logit)
    w = jnp.exp(logit - m)                                               # (G*R, 1)

    assign = assign_ref[...]                                             # (G,P,R)
    hs_w3 = (hs_r * w).reshape(G, R_pad, H)                              # (G,R,H)
    w3 = w.reshape(G, R_pad, 1)                                          # (G,R,1)
    dn = (((2,), (1,)), ((0,), (0,)))                                    # gpr,grh->gph
    numer = jax.lax.dot_general(assign, hs_w3, dn, preferred_element_type=f32)
    denom = jax.lax.dot_general(assign, w3, dn, preferred_element_type=f32)
    rev_out = (numer / jnp.maximum(denom, 1e-30)).reshape(G * P_pad, H)

    # -- 3) accumulate, add summed conv biases once, zero padded products --
    emb_ref[...] = (acc + rev_out + bias_ref[...]) * pmask_ref[...]
    # TODO(synk): H=32 < 128 lanes => masked stores (vst.msk).  For v5e-heavy
    # serving, pack 4 graphs' H=32 outputs per 128-lane row and unpack host-side.
    # TODO(synk): for realistic review counts, replace the dense (P_pad, R_pad)
    # incidence with scalar-prefetched per-product review offsets/lengths
    # (PrefetchScalarGridSpec) so the working set is O(P+R), not O(P*R).


# -----------------------------------------------------------------------------
# Jitted batched runner (the only per-call device work besides the kernel).
# -----------------------------------------------------------------------------
@functools.partial(jax.jit, static_argnames=("graphs_per_block",))
def _batched_product_embeddings(x_cat, review_x, assign, pmask,
                                w_cat, w_rev, a_fold, bias_sum,
                                *, graphs_per_block):
    B, P_pad, F4 = x_cat.shape
    _, R_pad, F = review_x.shape
    H = w_cat.shape[1]
    G = graphs_per_block
    assert B % G == 0
    num_blocks = B // G

    xc = x_cat.reshape(B * P_pad, F4).astype(jnp.bfloat16)
    rx = review_x.reshape(B * R_pad, F).astype(jnp.bfloat16)
    pm = pmask.reshape(B * P_pad, 1).astype(jnp.float32)
    asg = assign.astype(jnp.float32)

    # Per-graph block footprint at these shapes is ~6 KiB, so G up to ~1-2k
    # graphs/block stays well under v7x's 32 MiB default scoped VMEM with
    # double buffering; no vmem_limit_bytes override needed here.
    emb = pl.pallas_call(
        seller_gat_kernel,
        out_shape=jax.ShapeDtypeStruct((B * P_pad, H), jnp.float32),
        grid_spec=pltpu.PrefetchScalarGridSpec(
            num_scalar_prefetch=0,
            grid=(num_blocks,),
            in_specs=[
                pl.BlockSpec((G * P_pad, F4), lambda i: (i, 0)),
                pl.BlockSpec((G * R_pad, F), lambda i: (i, 0)),
                pl.BlockSpec((G, P_pad, R_pad), lambda i: (i, 0, 0)),
                pl.BlockSpec((G * P_pad, 1), lambda i: (i, 0)),
                pl.BlockSpec((F4, H), lambda i: (0, 0)),
                pl.BlockSpec((F, H), lambda i: (0, 0)),
                pl.BlockSpec((F, 1), lambda i: (0, 0)),
                pl.BlockSpec((1, H), lambda i: (0, 0)),
            ],
            out_specs=pl.BlockSpec((G * P_pad, H), lambda i: (i, 0)),
        ),
        compiler_params=pltpu.CompilerParams(
            dimension_semantics=("parallel",),   # shards blocks across v7x cores
        ),
    )(xc, rx, asg, pm, w_cat, w_rev, a_fold, bias_sum)
    return emb.reshape(B, P_pad, H)


# -----------------------------------------------------------------------------
# Parameters (same set as the PyTorch module) and one-time packing.
# -----------------------------------------------------------------------------
def init_params(key, feat_dim, hidden):
    ks = jax.random.split(key, 12)

    def glorot(k, shape):
        fan_in, fan_out = shape[-2], shape[-1]
        scale = jnp.sqrt(6.0 / (fan_in + fan_out))
        return jax.random.uniform(k, shape, jnp.float32, -scale, scale)

    return dict(
        w_src_feat=glorot(ks[0], (5, feat_dim, hidden)),
        w_dst_feat=glorot(ks[1], (5, 1, hidden)),
        att_src_feat=0.1 * jax.random.normal(ks[2], (5, hidden), jnp.float32),
        att_dst_feat=0.1 * jax.random.normal(ks[3], (5, hidden), jnp.float32),
        bias_feat=0.05 * jax.random.normal(ks[4], (5, hidden), jnp.float32),
        w_src_ps=glorot(ks[5], (1, hidden)),
        w_dst_ps=glorot(ks[6], (feat_dim, hidden)),
        att_src_ps=0.1 * jax.random.normal(ks[7], (1, hidden), jnp.float32),
        att_dst_ps=0.1 * jax.random.normal(ks[8], (1, hidden), jnp.float32),
        bias_ps=0.05 * jax.random.normal(ks[9], (1, hidden), jnp.float32),
        w_out=glorot(ks[10], (hidden, 1)),
        b_out=0.05 * jax.random.normal(ks[11], (1, 1), jnp.float32),
    )


def prepare_params(params):
    """One-time host-side packing (hoisted out of the per-call path)."""
    w_cat = jnp.concatenate([params['w_src_feat'][t] for t in range(4)], axis=0)
    w_rev = params['w_src_feat'][4]
    a_fold = (w_rev @ params['att_src_feat'][4]).reshape(-1, 1)
    bias_sum = jnp.sum(params['bias_feat'], axis=0, keepdims=True)
    # product.x == zeros(1,1) => every product->seller message W_src @ 0 == 0,
    # so seller_emb == bias_ps exactly and the seller probability is a
    # per-params constant (HeteroConv aggr='sum' assumed).  Hoisted here.
    seller_logit = params['bias_ps'] @ params['w_out'] + params['b_out']
    return dict(
        w_cat=w_cat.astype(jnp.bfloat16),
        w_rev=w_rev.astype(jnp.bfloat16),
        a_fold=a_fold.astype(jnp.bfloat16),
        bias_sum=bias_sum.astype(jnp.float32),
        prob=jax.nn.sigmoid(seller_logit)[0, 0],
    )


# -----------------------------------------------------------------------------
# Host-side glue: dense/padded mirror of build_seller_graph, batched.
# -----------------------------------------------------------------------------
def build_batched_graphs(seller_inputs):
    """Python traversal of the nested dict structure is unavoidable given the
    input format; everything downstream is a single jitted call."""
    B = len(seller_inputs)
    prods_per = [s['product_features'] for s in seller_inputs]
    Ps = [len(pp) for pp in prods_per]
    Rs = [sum(len(p['reviews']) for p in pp) for pp in prods_per]
    F = int(prods_per[0][0]['vision'].shape[-1])
    P_pad = max(_round_up(max(Ps), 8), 8)
    R_pad = max(_round_up(max(Rs + [1]), 8), 8)

    x_cat = np.zeros((B, P_pad, 4 * F), np.float32)
    review_x = np.zeros((B, R_pad, F), np.float32)
    assign = np.zeros((B, P_pad, R_pad), np.float32)
    pmask = np.zeros((B, P_pad, 1), np.float32)

    for b, pp in enumerate(prods_per):
        r_idx = 0
        for i, p in enumerate(pp):
            x_cat[b, i, 0 * F:1 * F] = np.asarray(p['vision'])[0]
            x_cat[b, i, 1 * F:2 * F] = np.asarray(p['text'])[0]
            x_cat[b, i, 2 * F:3 * F] = np.asarray(p['multimodal'])[0]
            x_cat[b, i, 3 * F:4 * F] = np.asarray(p['ensemble'])[0]
            pmask[b, i, 0] = 1.0
            for r in p['reviews']:
                review_x[b, r_idx] = np.asarray(r)[0]
                assign[b, i, r_idx] = 1.0
                r_idx += 1
    return x_cat, review_x, assign, pmask, Ps


def seller_graph_model_forward_batched(seller_inputs, packed_params,
                                        graphs_per_block=8):
    """Scores a list of seller graphs with one (gridded) pallas_call."""
    x_cat, review_x, assign, pmask, _ = build_batched_graphs(seller_inputs)
    B = len(seller_inputs)
    G = max(1, int(graphs_per_block))
    B_pad = _round_up(B, G)
    if B_pad > B:
        pad = ((0, B_pad - B), (0, 0), (0, 0))
        x_cat = np.pad(x_cat, pad)
        review_x = np.pad(review_x, pad)
        assign = np.pad(assign, pad)
        pmask = np.pad(pmask, pad)
    emb = _batched_product_embeddings(
        jnp.asarray(x_cat), jnp.asarray(review_x), jnp.asarray(assign),
        jnp.asarray(pmask), packed_params['w_cat'], packed_params['w_rev'],
        packed_params['a_fold'], packed_params['bias_sum'],
        graphs_per_block=G)
    probs = jnp.broadcast_to(packed_params['prob'], (B,))
    return probs, emb[:B]


def seller_graph_model_forward(seller_input, params, hidden=32):
    """Module-equivalent API: (seller probability scalar, product embeddings)."""
    del hidden  # determined by the parameter shapes
    packed = prepare_params(params)
    probs, emb = seller_graph_model_forward_batched([seller_input], packed,
                                                    graphs_per_block=1)
    return probs[0], emb[0]


# -----------------------------------------------------------------------------
# Plain f32 JAX reference of the PyTorch module's math (for a self-check).
# -----------------------------------------------------------------------------
def reference_forward(seller_inputs, params):
    w_cat = jnp.concatenate([params['w_src_feat'][t] for t in range(4)], axis=0)
    w_rev = params['w_src_feat'][4]
    att_src = params['att_src_feat'][4]
    bias_sum = jnp.sum(params['bias_feat'], axis=0)
    prob = jax.nn.sigmoid(params['bias_ps'] @ params['w_out']
                          + params['b_out'])[0, 0]
    all_embs = []
    for s in seller_inputs:
        p_embs = []
        for p in s['product_features']:
            xcat = jnp.concatenate([p['vision'][0], p['text'][0],
                                    p['multimodal'][0], p['ensemble'][0]])
            e = xcat @ w_cat + bias_sum
            if p['reviews']:
                rx = jnp.concatenate(p['reviews'], axis=0)
                hs = rx @ w_rev
                logit = jax.nn.leaky_relu(hs @ att_src, negative_slope=0.2)
                alpha = jax.nn.softmax(logit)
                e = e + alpha @ hs
            p_embs.append(e)
        all_embs.append(jnp.stack(p_embs))
    return prob, all_embs


if __name__ == "__main__":
    F_DIM, HIDDEN = 32, 32
    key = jax.random.PRNGKey(0)
    k_in, k_par = jax.random.split(key)

    # Small batch of sellers with different product / review counts to exercise
    # padding, the data-driven product mask, and a grid with >1 step.
    seller_specs = [(4, 2), (3, 3), (5, 1)]        # (num products, reviews each)
    n_keys = sum(1 + p * (4 + r) for p, r in seller_specs) + 8
    keys = iter(jax.random.split(k_in, n_keys))

    def make_seller(num_products, reviews_per_product):
        return {
            'seller_features': jax.random.normal(next(keys), (1, F_DIM), jnp.float32),
            'product_features': [
                {
                    'vision': jax.random.normal(next(keys), (1, F_DIM), jnp.float32),
                    'text': jax.random.normal(next(keys), (1, F_DIM), jnp.float32),
                    'multimodal': jax.random.normal(next(keys), (1, F_DIM), jnp.float32),
                    'ensemble': jax.random.normal(next(keys), (1, F_DIM), jnp.float32),
                    'reviews': [jax.random.normal(next(keys), (1, F_DIM), jnp.float32)
                                for _ in range(reviews_per_product)],
                }
                for _ in range(num_products)
            ],
        }

    sellers = [make_seller(p, r) for p, r in seller_specs]
    params = init_params(k_par, F_DIM, HIDDEN)
    packed = prepare_params(params)

    # Batched path: 2 graphs per grid step -> 4 padded graphs, grid=(2,).
    probs, embs = seller_graph_model_forward_batched(sellers, packed,
                                                     graphs_per_block=2)
    jax.block_until_ready((probs, embs))

    # Module-equivalent single-graph API (reuses the same kernel, G=1).
    prob0, emb0 = seller_graph_model_forward(sellers[0], params, hidden=HIDDEN)
    jax.block_until_ready((prob0, emb0))

    # Self-check against the plain f32 JAX reference (bf16 MXU operands =>
    # loose tolerance on the embeddings; the seller head is exact f32).
    ref_prob, ref_embs = reference_forward(sellers, params)
    for b, (p_cnt, _) in enumerate(seller_specs):
        np.testing.assert_allclose(np.asarray(embs[b, :p_cnt]),
                                   np.asarray(ref_embs[b]),
                                   rtol=5e-2, atol=5e-2)
    np.testing.assert_allclose(np.asarray(emb0[:seller_specs[0][0]]),
                               np.asarray(ref_embs[0]), rtol=5e-2, atol=5e-2)
    np.testing.assert_allclose(np.asarray(probs), float(ref_prob),
                               rtol=1e-5, atol=1e-6)
    np.testing.assert_allclose(float(prob0), float(ref_prob),
                               rtol=1e-5, atol=1e-6)

    print("KERNEL_OK")
</pallas_src>

<mosaic_0001>
module attributes {stable_mosaic.version = 11 : i64} {
  func.func @seller_gat_kernel(%arg0: i32, %arg1: memref<16x128xbf16, #tpu.memory_space<vmem>>, %arg2: memref<32x32xbf16, #tpu.memory_space<vmem>>, %arg3: memref<2x8x16xf32, #tpu.memory_space<vmem>>, %arg4: memref<16x1xf32, #tpu.memory_space<vmem>>, %arg5: memref<128x32xbf16, #tpu.memory_space<vmem>>, %arg6: memref<32x32xbf16, #tpu.memory_space<vmem>>, %arg7: memref<32x1xbf16, #tpu.memory_space<vmem>>, %arg8: memref<1x32xf32, #tpu.memory_space<vmem>>, %arg9: memref<16x32xf32, #tpu.memory_space<vmem>>) attributes {dimension_semantics = [#tpu.dimension_semantics<parallel>], iteration_bounds = array<i64: 2>, scalar_prefetch = 0 : i64, scratch_operands = 0 : i64, tpu.core_type = #tpu.core_type<tc>, window_params = [{transform_indices = @transform_0, window_bounds = array<i64: 16, 128>}, {transform_indices = @transform_1, window_bounds = array<i64: 32, 32>}, {transform_indices = @transform_2, window_bounds = array<i64: 2, 8, 16>}, {transform_indices = @transform_3, window_bounds = array<i64: 16, 1>}, {pipeline_mode = #tpu.pipeline_mode<synchronous>, transform_indices = @transform_4, window_bounds = array<i64: 128, 32>}, {pipeline_mode = #tpu.pipeline_mode<synchronous>, transform_indices = @transform_5, window_bounds = array<i64: 32, 32>}, {pipeline_mode = #tpu.pipeline_mode<synchronous>, transform_indices = @transform_6, window_bounds = array<i64: 32, 1>}, {pipeline_mode = #tpu.pipeline_mode<synchronous>, transform_indices = @transform_7, window_bounds = array<i64: 1, 32>}, {transform_indices = @transform_8, window_bounds = array<i64: 16, 32>}]} {
    %c0 = arith.constant 0 : index
    %c0_0 = arith.constant 0 : index
    %0 = vector.load %arg1[%c0, %c0_0] : memref<16x128xbf16, #tpu.memory_space<vmem>>, vector<16x128xbf16>
    %c0_1 = arith.constant 0 : index
    %c0_2 = arith.constant 0 : index
    %1 = vector.load %arg5[%c0_1, %c0_2] : memref<128x32xbf16, #tpu.memory_space<vmem>>, vector<128x32xbf16>
    %cst = arith.constant dense<0.000000e+00> : vector<16x32xf32>
    %2 = tpu.matmul %0, %1, %cst {dimension_numbers = #tpu.dot_dimension_numbers<[1], [0], [0], [1], [0, 0, 1, 1], [], []>} : vector<16x128xbf16>, vector<128x32xbf16>, vector<16x32xf32> -> vector<16x32xf32>
    %c0_3 = arith.constant 0 : index
    %c0_4 = arith.constant 0 : index
    %3 = vector.load %arg2[%c0_3, %c0_4] : memref<32x32xbf16, #tpu.memory_space<vmem>>, vector<32x32xbf16>
    %c0_5 = arith.constant 0 : index
    %c0_6 = arith.constant 0 : index
    %4 = vector.load %arg6[%c0_5, %c0_6] : memref<32x32xbf16, #tpu.memory_space<vmem>>, vector<32x32xbf16>
    %cst_7 = arith.constant dense<0.000000e+00> : vector<32x32xf32>
    %5 = tpu.matmul %3, %4, %cst_7 {dimension_numbers = #tpu.dot_dimension_numbers<[1], [0], [0], [1], [0, 0, 1, 1], [], []>} : vector<32x32xbf16>, vector<32x32xbf16>, vector<32x32xf32> -> vector<32x32xf32>
    %c0_8 = arith.constant 0 : index
    %c0_9 = arith.constant 0 : index
    %6 = vector.load %arg7[%c0_8, %c0_9] : memref<32x1xbf16, #tpu.memory_space<vmem>>, vector<32x1xbf16>
    %cst_10 = arith.constant dense<0.000000e+00> : vector<32x1xf32>
    %7 = tpu.matmul %3, %6, %cst_10 {dimension_numbers = #tpu.dot_dimension_numbers<[1], [0], [0], [1], [0, 0, 1, 1], [], []>} : vector<32x32xbf16>, vector<32x1xbf16>, vector<32x1xf32> -> vector<32x1xf32>
    %cst_11 = arith.constant 0.000000e+00 : f32
    %8 = vector.broadcast %cst_11 : f32 to vector<32x1xf32>
    %9 = arith.cmpf oge, %7, %8 : vector<32x1xf32>
    %cst_12 = arith.constant 2.000000e-01 : f32
    %10 = vector.broadcast %cst_12 : f32 to vector<32x1xf32>
    %11 = arith.mulf %10, %7 : vector<32x1xf32>
    %12 = arith.select %9, %7, %11 : vector<32x1xi1>, vector<32x1xf32>
    %13 = vector.shape_cast %12 : vector<32x1xf32> to vector<1x32x1xf32>
    %cst_13 = arith.constant dense<0xFF800000> : vector<1xf32>
    %14 = vector.multi_reduction <maximumf>, %13, %cst_13 [1, 2] : vector<1x32x1xf32> to vector<1xf32>
    %15 = vector.shape_cast %14 : vector<1xf32> to vector<1x1x1xf32>
    %16 = vector.extract %15[0, 0, 0] : f32 from vector<1x1x1xf32>
    %17 = vector.broadcast %16 : f32 to vector<32x1xf32>
    %18 = arith.subf %12, %17 : vector<32x1xf32>
    %19 = math.exp %18 : vector<32x1xf32>
    %c0_14 = arith.constant 0 : index
    %c0_15 = arith.constant 0 : index
    %c0_16 = arith.constant 0 : index
    %20 = vector.load %arg3[%c0_14, %c0_15, %c0_16] : memref<2x8x16xf32, #tpu.memory_space<vmem>>, vector<2x8x16xf32>
    %21 = vector.broadcast %19 : vector<32x1xf32> to vector<32x32xf32>
    %22 = arith.mulf %5, %21 : vector<32x32xf32>
    %23 = vector.shape_cast %22 : vector<32x32xf32> to vector<2x16x32xf32>
    %24 = vector.shape_cast %19 : vector<32x1xf32> to vector<2x16x1xf32>
    %cst_17 = arith.constant dense<0.000000e+00> : vector<2x8x32xf32>
    %25 = tpu.matmul %20, %23, %cst_17 {dimension_numbers = #tpu.dot_dimension_numbers<[2], [1], [1], [2], [0, 0, 0, 1, 1, 2], [0], [0]>} : vector<2x8x16xf32>, vector<2x16x32xf32>, vector<2x8x32xf32> -> vector<2x8x32xf32>
    %cst_18 = arith.constant dense<0.000000e+00> : vector<2x8x1xf32>
    %26 = tpu.matmul %20, %24, %cst_18 {dimension_numbers = #tpu.dot_dimension_numbers<[2], [1], [1], [2], [0, 0, 0, 1, 1, 2], [0], [0]>} : vector<2x8x16xf32>, vector<2x16x1xf32>, vector<2x8x1xf32> -> vector<2x8x1xf32>
    %cst_19 = arith.constant 1.000000e-30 : f32
    %27 = vector.broadcast %cst_19 : f32 to vector<2x8x1xf32>
    %28 = arith.maximumf %26, %27 : vector<2x8x1xf32>
    %29 = vector.broadcast %28 : vector<2x8x1xf32> to vector<2x8x32xf32>
    %30 = arith.divf %25, %29 : vector<2x8x32xf32>
    %31 = vector.shape_cast %30 : vector<2x8x32xf32> to vector<16x32xf32>
    %32 = arith.addf %2, %31 : vector<16x32xf32>
    %c0_20 = arith.constant 0 : index
    %c0_21 = arith.constant 0 : index
    %33 = vector.load %arg8[%c0_20, %c0_21] : memref<1x32xf32, #tpu.memory_space<vmem>>, vector<1x32xf32>
    %34 = vector.broadcast %33 : vector<1x32xf32> to vector<16x32xf32>
    %35 = arith.addf %32, %34 : vector<16x32xf32>
    %c0_22 = arith.constant 0 : index
    %c0_23 = arith.constant 0 : index
    %36 = vector.load %arg4[%c0_22, %c0_23] : memref<16x1xf32, #tpu.memory_space<vmem>>, vector<16x1xf32>
    %37 = vector.broadcast %36 : vector<16x1xf32> to vector<16x32xf32>
    %38 = arith.mulf %35, %37 : vector<16x32xf32>
    %c0_24 = arith.constant 0 : index
    %c0_25 = arith.constant 0 : index
    %39 = vector.load %arg9[%c0_24, %c0_25] : memref<16x32xf32, #tpu.memory_space<vmem>>, vector<16x32xf32>
    tpu.vector_store %arg9[%c0_24, %c0_25], %38 {strides = array<i32>} : memref<16x32xf32, #tpu.memory_space<vmem>>, vector<16x32xf32>,
    return
  }
  func.func @transform_0(%arg0: i32) -> (i32, i32) {
    %c0_i32 = arith.constant 0 : i32
    %c0_i32_0 = arith.constant 0 : i32
    return %arg0, %c0_i32 : i32, i32
  }
  func.func @transform_1(%arg0: i32) -> (i32, i32) {
    %c0_i32 = arith.constant 0 : i32
    %c0_i32_0 = arith.constant 0 : i32
    return %arg0, %c0_i32 : i32, i32
  }
  func.func @transform_2(%arg0: i32) -> (i32, i32, i32) {
    %c0_i32 = arith.constant 0 : i32
    %c0_i32_0 = arith.constant 0 : i32
    %c0_i32_1 = arith.constant 0 : i32
    return %arg0, %c0_i32, %c0_i32_0 : i32, i32, i32
  }
  func.func @transform_3(%arg0: i32) -> (i32, i32) {
    %c0_i32 = arith.constant 0 : i32
    %c0_i32_0 = arith.constant 0 : i32
    return %arg0, %c0_i32 : i32, i32
  }
  func.func @transform_4(%arg0: i32) -> (i32, i32) {
    %c0_i32 = arith.constant 0 : i32
    %c0_i32_0 = arith.constant 0 : i32
    %c0_i32_1 = arith.constant 0 : i32
    return %c0_i32, %c0_i32_0 : i32, i32
  }
  func.func @transform_5(%arg0: i32) -> (i32, i32) {
    %c0_i32 = arith.constant 0 : i32
    %c0_i32_0 = arith.constant 0 : i32
    %c0_i32_1 = arith.constant 0 : i32
    return %c0_i32, %c0_i32_0 : i32, i32
  }
  func.func @transform_6(%arg0: i32) -> (i32, i32) {
    %c0_i32 = arith.constant 0 : i32
    %c0_i32_0 = arith.constant 0 : i32
    %c0_i32_1 = arith.constant 0 : i32
    return %c0_i32, %c0_i32_0 : i32, i32
  }
  func.func @transform_7(%arg0: i32) -> (i32, i32) {
    %c0_i32 = arith.constant 0 : i32
    %c0_i32_0 = arith.constant 0 : i32
    %c0_i32_1 = arith.constant 0 : i32
    return %c0_i32, %c0_i32_0 : i32, i32
  }
  func.func @transform_8(%arg0: i32) -> (i32, i32) {
    %c0_i32 = arith.constant 0 : i32
    %c0_i32_0 = arith.constant 0 : i32
    return %arg0, %c0_i32 : i32, i32
  }
}

</mosaic_0001>

<bundles_post_ra>
// kernel: _batched_product_embeddings.1
= control target key start
LH: loop header
LB: loop body
LE: loop exit
PB: predicated region body
PF: predicated region fallthrough
CT: control target
= control target key end

     0   :  { %13 = vsyncpa [#allocation3], 0  ;;  %s1313_s0 = inlined_call_operand.vmem [shape: bf16[32,128], index: 0, kind: input, shape index: {}]   ;;  %s1314_s1 = inlined_call_operand.vmem [shape: bf16[64,32], index: 1, kind: input, shape index: {}]   ;;  %s1315_s2 = inlined_call_operand.vmem [shape: f32[4,8,16], index: 2, kind: input, shape index: {}]   ;;  %s1316_s3 = inlined_call_operand.vmem [shape: f32[32,1], index: 3, kind: input, shape index: {}]   ;;  %s1317_s4 = inlined_call_operand.vmem [shape: bf16[128,32], index: 4, kind: input, shape index: {}]   ;;  %s1318_s5 = inlined_call_operand.vmem [shape: bf16[32,32], index: 5, kind: input, shape index: {}]   ;;  %s1319_s6 = inlined_call_operand.vmem [shape: bf16[32,1], index: 6, kind: input, shape index: {}]   ;;  %s1320_s7 = inlined_call_operand.vmem [shape: f32[1,32], index: 7, kind: input, shape index: {}]   ;;  %s1321_s8 = inlined_call_operand.hbm [shape: f32[32,32], index: 8, kind: output, shape index: {}]  }
   0x1   :  { %15 = vsyncpa [#allocation3 + $0x1], 0  ;;  %s1158_s27 = smov 0   ;;  %s1160_s28 = smov 0  }
   0x2   :  { %s1162_s29 = smov 0   ;;  %s1164_s30 = smov 0  }
   0x3 LB: > { %s1179_s9 = sadd.s32 4294967295, %s1108_s30   ;;  %s884_s10 = sadd.s32 4294967294, %s1108_s30   ;;  %s1108_s30 = sphi %s1164_s30, %s1327_s30   ;;  %s1104_s29 = sphi %s1162_s29, %s1326_s29   ;;  %s1100_s28 = sphi %s1160_s28, %s1325_s28   ;;  %s1096_s27 = sphi %s1158_s27, %s1324_s27  }
   0x4   : > { %s1183_s11 = sadd.s32 1, %s1108_s30   ;;  %s216_s12 = sadd.s32 1, %s1104_s29 }
   0x5   : > { %s213_s13 = ssub.s32 %s1108_s30, %s1183_s11  ;;  %p226_p0 = scmp.ne.s32.totalorder %s1104_s29, %s1100_s28 }
   0x6   : > { %p214_p1 = scmp.eq.s32.totalorder %s213_s13, 0  ;;  %p227_p2 = scmp.eq.s32.totalorder %s1179_s9, 1 }
   0x7   : > { %p232_p3 = scmp.ne.s32.totalorder %s1100_s28, %s1096_s27  ;;  %p233_p4 = scmp.eq.s32.totalorder %s884_s10, 1 }
   0x8   : > { %s1194_s14 = scalar_select %p214_p1, %s1104_s29, %s216_s12  }
   0x9   : > { %p1196_p5 = por %p227_p2, %p226_p0  ;;  %p1200_p6 = por %p233_p4, %p232_p3 }
   0xa   : > { %p887_p7 = scmp.ge.s32.totalorder %s1108_s30, 1  ;;  %p299_p8 = scmp.lt.s32.totalorder %s1108_s30, 3 }
   0xc   : > { %p300_p9 = pnand %p887_p7, %p299_p8 }
   0xd   : > { %s891_s19 = sshll.u32 (!%p300_p9), %s1179_s9, 2  ;;  %s889_s18 = sshll.u32 (!%p300_p9), %s1179_s9, 1 }
   0xe   : > { %303 = sbr.rel (%p300_p9) target bundleno = 783 (0x30f), region = 52  ;;  %p355_p10 = scmp.lt.s32.totalorder (!%p300_p9), %s891_s19, 7 }
   0xf   : > { %p349_p11 = scmp.lt.s32.totalorder (!%p300_p9), %s889_s18, 3  ;;  %s985_s10 = sshll.u32 (!%p300_p9), %s1179_s9, 4 }
  0x13   : > { %v984_v0 = vld [vmem:[%s1319_s6 + $0x8] sm:$0xff]  ;;  %v983_v1 = vld [vmem:[%s1319_s6] sm:$0xff]  ;;  %s1329_s19 = smov (!%p355_p10, %s891_s19), 7  ;;  %vm422_vm0 = vcmask 261120   ;;  %vm495_vm4 = vcmask 7168   ;;  %v1110_v32 = vmov 0  }
  0x14   : > { %470 = vmatpush.bf16.msra.mxu1 %v984_v0  ;;  %s892_s22 = sshll.u32 %s1329_s19, 2  ;;  %v982_v23 = vld [vmem:[%s1318_s5 + $0x8] sm:$0xff]  ;;  %v981_v24 = vld [vmem:[%s1318_s5] sm:$0xff]  ;;  %1032 = vset.pattern.permute.xlu2 %v1110_v32  ;;  %v978_v48 = vld [vmem:[%s1317_s4 + $0x38] sm:$0xff]  ;;  %s1331_s18 = smov (!%p349_p11, %s889_s18), 3  ;;  %vm551_vm6 = vcmask 130048  }
  0x15   : > { %s358_s25 = scalar_lea.vmem %s1314_s1, %s892_s22  ;;  %435 = vmatpush.bf16.msra.mxu0 %v982_v23  ;;  %1031 = vset.pattern.permute.xlu1 %v1110_v32  ;;  %v977_v49 = vld [vmem:[%s1317_s4 + $0x30] sm:$0xff]  ;;  %v976_v51 = vld [vmem:[%s1317_s4 + $0x28] sm:$0xff]  ;;  %v975_v53 = vld [vmem:[%s1317_s4 + $0x20] sm:$0xff]  ;;  %s890_s12 = sshll.u32 %s1331_s18, 2 }
  0x16   : > { %v979_v2 = vld [vmem:[%s358_s25] sm:$0xff]  ;;  %v980_v3 = vld [vmem:[%s358_s25 + $0x8] sm:$0xff]  ;;  %1030 = vset.pattern.permute.xlu0 %v1110_v32  ;;  %s894_s25 = sshll.u32 %s1331_s18, 3  ;;  %v974_v59 = vld [vmem:[%s1317_s4 + $0x18] sm:$0xff]  ;;  %s352_s19 = scalar_lea.vmem %s1313_s0, %s890_s12 }
  0x17   : > { %v973_v62 = vld [vmem:[%s1317_s4 + $0x10] sm:$0xff]  ;;  %s370_s22 = scalar_lea.vmem %s1316_s3, %s894_s25  ;;  %s345_s18 = sand.u32 1, %s1100_s28  }
  0x18   : > { %471 = vmatpush.bf16.msra.mxu1 %v983_v1  ;;  %s888_s24 = sshll.u32 %s345_s18, 4  ;;  %s771_s9 = scalar_lea.sflag [#allocation3], %s345_s18 }
  0x19   : > { %436 = vmatpush.bf16.msra.mxu0 %v981_v24  ;;  %s347_s26 = scalar_lea.vmem [#allocation2], %s888_s24  ;;  %s1066_s24 = scalar_lea.hbm %s1321_s8, 32 }
  0x1b   : > { %923 = vmatmul.msk.bf16.vlgmr.msra.gmra.mxu1 %vm422_vm0, %v979_v2 }
  0x1c   : > { %913 = vmatmul.msk.bf16.vlgmr.msra.gmra.mxu0 %vm422_vm0, %v979_v2  ;;  %v972_v2 = vld [vmem:[%s1317_s4 + $0x8] sm:$0xff] }
  0x1d   : > { %734 = vmatpush.bf16.msrb.mxu0 %v978_v48 }
  0x21   : > { %735 = vmatpush.bf16.msrb.mxu0 %v977_v49 }
  0x25   : > { %736 = vmatpush.bf16.msrb.mxu0 %v976_v51 }
  0x29   : > { %737 = vmatpush.bf16.msrb.mxu0 %v975_v53 }
  0x2b   : > { %924 = vmatmul.msk.bf16.gmra.mxu1 %vm422_vm0, %v980_v3 }
  0x2c   : > { %914 = vmatmul.msk.bf16.gmra.mxu0 %vm422_vm0, %v980_v3  ;;  %v971_v3 = vld [vmem:[%s1317_s4] sm:$0xff] }
  0x2d   : > { %738 = vmatpush.bf16.msrb.mxu0 %v974_v59 }
  0x31   : > { %739 = vmatpush.bf16.msrb.mxu0 %v973_v62 }
  0x35   : > { %740 = vmatpush.bf16.msrb.mxu0 %v972_v2 }
  0x39   : > { %741 = vmatpush.bf16.msrb.mxu0 %v971_v3 }
  0x98   : > { %v473_v4 = vpop.f32.mrf.mxu1 }
  0x99   : > { %v487_v8 = vmul.f32 0.2, %v473_v4  ;;  %vm483_vm2 = vcmp.ge.f32.partialorder %v473_v4, 0.0  ;;  %v438_v46 = vpop.f32.mrf.mxu0 }
  0x9b   : > { %v491_v12 = vsel %vm483_vm2, %v473_v4, %v487_v8  ;;  %v970_v4 = vld [vmem:[%s352_s19] sm:$0xff]  ;;  %s783_s19 = sshll.u32 %s347_s26, 4  ;;  %s784_s19 = int_to_ptr.vmem [resolvable:$true] %s783_s19 }
  0x9c   : > { %v496_v18 = vsel %vm495_vm4, %v491_v12, -inf  ;;  %742 = vmatmul.bf16.vlgmr.msrb.gmra.mxu0 %v970_v4 }
  0xa0   : > { %v475_v5 = vpop.f32.mrf.mxu1 }
  0xa1   : > { %v488_v7 = vmul.f32 0.2, %v475_v5  ;;  %vm484_vm1 = vcmp.ge.f32.partialorder %v475_v5, 0.0  ;;  %v440_v47 = vpop.f32.mrf.mxu0 }
  0xa3   : > { %v492_v10 = vsel %vm484_vm1, %v475_v5, %v488_v7 }
  0xa4   : > { %v497_v15 = vsel %vm495_vm4, %v492_v10, -inf }
  0xa5   : > { %v500_v20 = vmax.f32 %v496_v18, %v497_v15 }
  0xa8   : > { %v478_v6 = vpop.f32.mrf.mxu1 }
  0xa9   : > { %v489_v9 = vmul.f32 0.2, %v478_v6  ;;  %vm485_vm3 = vcmp.ge.f32.partialorder %v478_v6, 0.0  ;;  %v443_v50 = vpop.f32.mrf.mxu0 }
  0xab   : > { %v493_v13 = vsel %vm485_vm3, %v478_v6, %v489_v9 }
  0xac   : > { %v498_v19 = vsel %vm495_vm4, %v493_v13, -inf }
  0xb0   : > { %v480_v11 = vpop.f32.mrf.mxu1 }
  0xb1   : > { %vm486_vm5 = vcmp.ge.f32.partialorder %v480_v11, 0.0  ;;  %v490_v14 = vmul.f32 0.2, %v480_v11  ;;  %v445_v54 = vpop.f32.mrf.mxu0 }
  0xb3   : > { %v494_v16 = vsel %vm486_vm5, %v480_v11, %v490_v14  ;;  %v755_v11 = vld [vmem:[%s370_s22 + $0x8] sm:$0xff] }
  0xb4   : > { %v499_v17 = vsel %vm495_vm4, %v494_v16, -inf }
  0xb5   : > { %v501_v21 = vmax.f32 %v498_v19, %v499_v17 }
  0xb7   : > { %v502_v22 = vmax.f32 %v500_v20, %v501_v21 }
  0xb9   : > { %503 = vmax.xlane.f32.xlu0 %v502_v22 }
 0x119   : > { %v743_v24 = vpop.f32.mrf.mxu0 }
 0x12c   : > { %v504_v25 = vpop.xlane.xlu0 %503 }
 0x12d   : > { %v505_v26 = vrot.slane %v504_v25, 4 }
 0x12f   : > { %v506_v27 = vmax.f32 %v504_v25, %v505_v26 }
 0x131   : > { %v507_v28 = vrot.slane %v506_v27, 2 }
 0x133   : > { %v508_v29 = vmax.f32 %v506_v27, %v507_v28  ;;  %v1033_v27 = vld [vmem:[%s1320_s7] ss:$0 sm:$0xff] }
 0x135   : > { %v509_v30 = vrot.slane %v508_v29, 1 }
 0x137   : > { %v510_v31 = vmax.f32 %v508_v29, %v509_v30 }
 0x139   : > { %986 = vpush %v510_v31 }
 0x16a   : > { %s987_s17 = spop %986 }
 0x16b   : > { %v512_v33 = vstv %s987_s17  ;;  %s364_s17 = scalar_lea.vmem %s1315_s2, %s894_s25 }
 0x16c   : > { %v514_v34 = vsub.f32 %v492_v10, %v512_v33  ;;  %v515_v35 = vsub.f32 %v493_v13, %v512_v33  ;;  %v516_v36 = vsub.f32 %v494_v16, %v512_v33  ;;  %v513_v40 = vsub.f32 %v491_v12, %v512_v33  ;;  %v526_v61 = vld [vmem:[%s364_s17 + $0x8] sm:$0xff]  ;;  %v525_v1 = vld [vmem:[%s364_s17] sm:$0xff]  ;;  %s782_s17 = scalar_lea.hbm %s1321_s8, %s985_s10 }
 0x16d   : > { %v754_v12 = vld [vmem:[%s370_s22] sm:$0xff]  ;;  %s785_s20 = sshll.u32 %s782_s17, 4  ;;  %s786_s20 = int_to_ptr.hbm [resolvable:$true] %s785_s20 }
 0x16e   : > { %v519_v37 = vmul.f32 1.442695, %v514_v34  ;;  %v521_v38 = vmul.f32 1.442695, %v515_v35  ;;  %v523_v39 = vmul.f32 1.442695, %v516_v36 }
 0x16f   : > { %v517_v42 = vmul.f32 1.442695, %v513_v40  ;;  %s1060_s21 = sshra.s32 %s786_s20, 4  ;;  %s1061_s21 = int_to_ptr.hbm [resolvable:$true] %s1060_s21 }
 0x170   : > { %1034 = vpow2.f32 %v519_v37  ;;  %s1062_s22 = scalar_lea.hbm %s1061_s21, 16  ;;  %p1067_p1 = scmp.lt.s32.totalorder %s1061_s21, %s1321_s8 }
 0x171   : > { %1036 = vpow2.f32 %v521_v38  ;;  %p1063_p12 = scmp.ne.s32.totalorder %s1061_s21, %s1062_s22  ;;  %p1068_p2 = scmp.lt.s32.totalorder %s1066_s24, %s1062_s22 }
 0x172   : > { %1038 = vpow2.f32 %v523_v39 }
 0x173   : > { %1040 = vpow2.f32 %v517_v42  ;;  %p1064_p13 = pnand %p1063_p12, %p1196_p5  ;;  %p1069_p3 = por %p1068_p2, %p1067_p1 }
 0x175   : > { %p1065_p0 = pneg %p1064_p13 }
 0x176   : > { %v1035_v41 = vpop.eup %1034 }
 0x177   : > { %v1037_v43 = vpop.eup %1036  ;;  %534 = vperm.xlu0 %1030, %v1035_v41   ;;  %p1070_p4 = pnand %p1069_p3, %p1065_p0 }
 0x178   : > { %v1039_v44 = vpop.eup %1038  ;;  %539 = vperm.xlu2 %1032, %v1037_v43  }
 0x179   : > { %544 = vperm.xlu1 %1031, %v1039_v44   ;;  %v1041_v45 = vpop.eup %1040 }
 0x181   : > { %529 = vperm.xlu1 %1031, %v1041_v45  }
 0x1d2   : > { %v540_v56 = vpop.permute.xlu2 %539 }
 0x1d3   : > { %v549_v60 = vmul.f32 %v540_v56, %v443_v50 }
 0x1e9   : > { %v535_v52 = vpop.permute.xlu0 %534 }
 0x1ea   : > { %v548_v55 = vmul.f32 %v535_v52, %v440_v47 }
 0x1eb   : > { %v545_v57 = vpop.permute.xlu1 %544 }
 0x1ec   : > { %569 = vmatpush.msra.mxu2 %v548_v55  ;;  %v550_v58 = vmul.f32 %v545_v57, %v445_v54 }
 0x1ee   : > { %592 = vmatpush.msra.mxu3 %v550_v58 }
 0x1f0   : > { %593 = vmatpush.msra.mxu3 %v549_v60 }
 0x1f1   : > { %926 = vmatmul.msk.f32.vlgmr.msra.gmra.mxu3 %vm551_vm6, %v526_v61 }
 0x1f2   : > { %632 = vmatpush.msrb.mxu3 %v1039_v44 }
 0x1f3   : > { %v530_v63 = vpop.permute.xlu1 %529 }
 0x1f4   : > { %v547_v0 = vmul.f32 %v530_v63, %v438_v46  ;;  %633 = vmatpush.msrb.mxu3 %v1037_v43  ;;  %v745_v43 = vpop.f32.mrf.mxu0 }
 0x1f6   : > { %570 = vmatpush.msra.mxu2 %v547_v0 }
 0x1f7   : > { %925 = vmatmul.msk.f32.vlgmr.msra.gmra.mxu2 %vm551_vm6, %v525_v1 }
 0x1f8   : > { %612 = vmatpush.msrb.mxu2 %v1035_v41 }
 0x1f9   : > { %928 = vmatmul.msk.f32.vlgmr.msrb.gmra.mxu3 %vm551_vm6, %v526_v61 }
 0x1fa   : > { %613 = vmatpush.msrb.mxu2 %v1041_v45 }
 0x1ff   : > { %927 = vmatmul.msk.f32.vlgmr.msrb.gmra.mxu2 %vm551_vm6, %v525_v1 }
 0x274   : > { %v595_v5 = vpop.f32.mrf.mxu3 }
 0x27a   : > { %v572_v6 = vpop.f32.mrf.mxu2 }
 0x27c   : > { %v635_v7 = vpop.f32.mrf.mxu3 }
 0x27d   : > { %v639_v8 = vmax.f32 %v635_v7, 1e-30 }
 0x27f   : > { %647 = vperm.xlu1 %1031, %v639_v8  }
 0x282   : > { %v615_v9 = vpop.f32.mrf.mxu2 }
 0x283   : > { %v638_v10 = vmax.f32 %v615_v9, 1e-30 }
 0x285   : > { %642 = vperm.xlu2 %1032, %v638_v10  }
 0x287   : > { %763 = vperm.xlu1 %1031, %v755_v11  }
 0x28d   : > { %758 = vperm.xlu2 %1032, %v754_v12  }
 0x2df   : > { %v643_v13 = vpop.permute.xlu2 %642 }
 0x2e0   : > { %1042 = vrcp.f32 %v643_v13  ;;  %v661_v17 = vand.u32 2147483648, %v643_v13  ;;  %v659_v19 = vand.u32 2147483647, %v643_v13  ;;  %vm655_vm8 = vweird.f32 %v643_v13 }
 0x2e2   : > { %v662_v21 = vor.u32 1.1754944e-38, %v661_v17  ;;  %vm660_vm10 = vcmp.eq.f32.partialorder %v659_v19, 8.507059e+37 }
 0x2e6   : > { %v1043_v14 = vpop.eup %1042 }
 0x2e7   : > { %v651_v15 = vmul.f32 %v1043_v14, %v643_v13  ;;  %vm656_vm7 = vweird.f32 %v1043_v14  ;;  %v759_v30 = vpop.permute.xlu2 %758 }
 0x2e8   : > { %vm657_vm9 = vmor %vm655_vm8, %vm656_vm7 }
 0x2e9   : > { %v652_v16 = vsub.f32 1.0, %v651_v15 }
 0x2eb   : > { %v653_v18 = vmul.f32 %v1043_v14, %v652_v16 }
 0x2ed   : > { %v654_v20 = vadd.f32 %v1043_v14, %v653_v18 }
 0x2ef   : > { %v658_v22 = vsel %vm657_vm9, %v1043_v14, %v654_v20 }
 0x2f0   : > { %v663_v23 = vsel %vm660_vm10, %v662_v21, %v658_v22 }
 0x2f1   : > { %v648_v25 = vpop.permute.xlu1 %647  ;;  %v664_v26 = vmul.f32 %v663_v23, %v572_v6 }
 0x2f2   : > { %1044 = vrcp.f32 %v648_v25  ;;  %v676_v35 = vand.u32 2147483648, %v648_v25  ;;  %v674_v37 = vand.u32 2147483647, %v648_v25  ;;  %vm670_vm12 = vweird.f32 %v648_v25 }
 0x2f3   : > { %v744_v28 = vadd.f32 %v743_v24, %v664_v26 }
 0x2f4   : > { %v677_v39 = vor.u32 1.1754944e-38, %v676_v35  ;;  %vm675_vm14 = vcmp.eq.f32.partialorder %v674_v37, 8.507059e+37 }
 0x2f5   : > { %v752_v29 = vadd.f32 %v1033_v27, %v744_v28 }
 0x2f7   : > { %v766_v31 = vmul.f32 %v759_v30, %v752_v29 }
 0x2f8   : > { %v1045_v32 = vpop.eup %1044 }
 0x2f9   : > { %v666_v33 = vmul.f32 %v1045_v32, %v648_v25  ;;  %768 = vst.msk [vmem:[%s347_s26] sm:$0xff] %vm422_vm0, %v766_v31  ;;  %vm671_vm11 = vweird.f32 %v1045_v32  ;;  %v764_v46 = vpop.permute.xlu1 %763 }
 0x2fa   : > { %vm672_vm13 = vmor %vm670_vm12, %vm671_vm11 }
 0x2fb   : > { %v667_v34 = vsub.f32 1.0, %v666_v33 }
 0x2fd   : > { %v668_v36 = vmul.f32 %v1045_v32, %v667_v34 }
 0x2ff   : > { %v669_v38 = vadd.f32 %v1045_v32, %v668_v36 }
 0x301   : > { %v673_v40 = vsel %vm672_vm13, %v1045_v32, %v669_v38 }
 0x302   : > { %v678_v41 = vsel %vm675_vm14, %v677_v39, %v673_v40 }
 0x303   : > { %v679_v42 = vmul.f32 %v678_v41, %v595_v5 }
 0x305   : > { %v746_v44 = vadd.f32 %v745_v43, %v679_v42 }
 0x307   : > { %v753_v45 = vadd.f32 %v1033_v27, %v746_v44 }
 0x309   : > { %v767_v47 = vmul.f32 %v764_v46, %v753_v45 }
 0x30b   : > { %769 = vst.msk [vmem:[%s347_s26 + $0x8] sm:$0xff] %vm422_vm0, %v767_v47 }
 0x30c   : > { %1073 = shalt.err (!%p1070_p4)
}
 0x30d   : > { %s1111_s18 = smov 128   ;;  %s1112_s26 = smov 8  }
 0x30e   : > { %988 = dma.vmem_to_hbm [thread:$0]  (%p1196_p5), %s784_s19, 256, %s786_s20, %s771_s9, %s1111_s18, %s1111_s18, %s1112_s26  }
 0x30f PF: > { %p994_p7 = scmp.ge.s32.totalorder %s1108_s30, 2  ;;  %s800_s13 = sand.u32 1, %s1096_s27  }
 0x310   : > { %s801_s17 = scalar_lea.sflag [#allocation3], %s800_s13 }
 0x311   : > { %p991_p8 = pnand %p994_p7, %p1200_p6 }
 0x313   : > { %p992_p9 = pneg %p991_p8 }
 0x315   : > { %1091 = dma.done.wait (%p992_p9), %s801_s17, 256  }
 0x316   : > { %1093 = vsyncadd (%p992_p9), %s801_s17, 4294967040  ;;  %p18_p10 = scmp.ge.s32.totalorder %s1183_s11, 4   ;;  %s1324_s27 = smov %s1100_s28 }
 0x317   : > { %s1325_s28 = smov %s1104_s29  ;;  %s1326_s29 = smov %s1194_s14 }
 0x318   : > { %s1327_s30 = smov %s1183_s11  ;;  %20 = sbr.rel (!%p18_p10) target bundleno = 3 (0x3), region = 96 }
 0x31d   :  { %807 = vsyncpa [#allocation3], 1 }
 0x31e   :  { %809 = vsyncpa [#allocation3 + $0x1], 1 }

</bundles_post_ra>
